<compile_context>
chip_gen: v6e
topology: v6e:2x2x1
jax: 0.10.0
libtpu: 0.0.40
codegen_flags: <defaults>
</compile_context>

<pallas_src>
import functools

import jax
import jax.numpy as jnp
from jax.experimental import pallas as pl
from jax.experimental.pallas import tpu as pltpu


def _cdiv(a, b):
    return -(-a // b)


def _round_up(a, b):
    return _cdiv(a, b) * b


def _shared_dw_conv_kernel(w_ref, b_ref, *refs, halo_rows, has_halo):
    """w_ref: SMEM (1, K) f32 weights; b_ref: SMEM (1, 1) f32 bias.

    refs = (halo_ref?, x_ref, o_ref).
      halo_ref: VMEM (halo_rows, TL) tail rows of the previous seq block.
      x_ref / o_ref: VMEM (TS, TL) tiles of the flattened input / output.
    """
    if has_halo:
        halo_ref, x_ref, o_ref = refs
    else:
        halo_ref = None
        x_ref, o_ref = refs

    K = w_ref.shape[1]
    TS, TL = x_ref.shape

    # bf16 math stays bf16 (native VALU on v6e/v7x, halves temporaries);
    # everything else computes in f32.
    if x_ref.dtype in (jnp.float32, jnp.bfloat16):
        cdtype = x_ref.dtype
    else:
        cdtype = jnp.float32

    x = x_ref[...].astype(cdtype)

    # Zero-shift tap folded with the bias: one full-tile VPU pass.
    acc = w_ref[0, K - 1].astype(cdtype) * x + b_ref[0, 0].astype(cdtype)

    if K > 1:
        if has_halo:
            prev = halo_ref[...].astype(cdtype)
            # First seq block: the halo is causal zero padding.
            gate = (pl.program_id(0) > 0).astype(cdtype)
            prev = prev * gate
        else:
            prev = jnp.zeros((halo_rows, TL), cdtype)

        # Halo-extended block (aligned concat).  Every causal tap is a static
        # slice of it -> no per-tap full-tile mask / iota / scatter fix-up.
        ext = jnp.concatenate([prev, x], axis=0)           # (halo_rows + TS, TL)
        for k in range(K - 1):
            s = K - 1 - k                                   # causal shift of tap k
            shifted = ext[halo_rows - s:halo_rows - s + TS, :]
            acc = acc + w_ref[0, k].astype(cdtype) * shifted

    o_ref[...] = acc.astype(o_ref.dtype)


@functools.partial(jax.jit, static_argnames=("tile_seq", "tile_lane"))
def spatial_depthwise_shared_conv(x, weight, bias, *, tile_seq=1024, tile_lane=1024):
    """x: [seq_len, batch, heads, d_k]; weight: [K]; bias: [1]."""
    seq_len, batch, heads, d_k = x.shape
    K = int(weight.shape[0])
    F = batch * heads * d_k
    xf = x.reshape(seq_len, F)                      # contiguous reshape: free

    itembytes = jnp.dtype(x.dtype).itemsize
    # Native sublane packing: 8 rows for 4-byte, 16 for 2-byte, 32 for 1-byte.
    packing = (4 // max(1, itembytes)) * 8
    HALO = max(packing, _round_up(K - 1, packing))

    # Clamp tiles to the problem size, keep HALO / 128 alignment.
    ts = min(tile_seq, _round_up(seq_len, HALO))
    ts = max(HALO, (ts // HALO) * HALO)
    tl = min(tile_lane, _round_up(F, 128))
    tl = max(128, (tl // 128) * 128)

    n_seq = _cdiv(seq_len, ts)
    n_lane = _cdiv(F, tl)

    # v7x has 2 TensorCores sharing HBM: make sure mid-sized problems give both
    # cores work instead of running as a (1, 1) grid.
    if n_seq == 1 and n_lane == 1 and F > 128:
        tl_half = max(128, _round_up(_cdiv(F, 2), 128))
        if tl_half < tl:
            tl = tl_half
            n_lane = _cdiv(F, tl)

    has_halo = (n_seq > 1) and (K > 1)
    hbps = ts // HALO                                # halo blocks per seq block

    kernel = functools.partial(_shared_dw_conv_kernel,
                               halo_rows=HALO, has_halo=has_halo)

    in_specs = [
        pl.BlockSpec(memory_space=pltpu.MemorySpace.SMEM),   # weights (1, K)
        pl.BlockSpec(memory_space=pltpu.MemorySpace.SMEM),   # bias    (1, 1)
    ]
    operands = [weight.reshape(1, K).astype(jnp.float32),
                bias.reshape(1, 1).astype(jnp.float32)]
    if has_halo:
        # Halo: the HALO rows just above this seq block (clamped to block 0 for
        # the first seq block; the kernel gates it to zero there).
        in_specs.append(
            pl.BlockSpec((HALO, tl),
                         lambda i, j: (jnp.maximum(i * hbps - 1, 0), j)))
        operands.append(xf)
    in_specs.append(pl.BlockSpec((ts, tl), lambda i, j: (i, j)))     # x tile
    operands.append(xf)

    # VMEM budget: double-buffered x/out (+ halo) blocks plus the kernel's
    # compute-dtype temporaries; capped below v7x's 64 MiB physical VMEM.
    cbytes = 2 if x.dtype == jnp.bfloat16 else 4
    blocks_bytes = 2 * (2 * ts * tl) * itembytes
    if has_halo:
        blocks_bytes += 2 * HALO * tl * itembytes
    temps_bytes = 3 * ts * tl * cbytes + HALO * tl * cbytes
    vmem_limit = int(min(48 << 20,
                         max(24 << 20, blocks_bytes + temps_bytes + (2 << 20))))

    out_flat = pl.pallas_call(
        kernel,
        out_shape=jax.ShapeDtypeStruct((seq_len, F), x.dtype),
        grid=(n_seq, n_lane),
        in_specs=in_specs,
        out_specs=pl.BlockSpec((ts, tl), lambda i, j: (i, j)),
        compiler_params=pltpu.CompilerParams(
            dimension_semantics=("parallel", "parallel"),
            vmem_limit_bytes=vmem_limit,
        ),
    )(*operands)

    return out_flat.reshape(seq_len, batch, heads, d_k)


def _reference(x, weight, bias):
    """Pure-JAX reference mirroring the PyTorch forward."""
    seq_len = x.shape[0]
    K = weight.shape[0]
    xf = x.reshape(seq_len, -1).astype(jnp.float32)
    xp = jnp.pad(xf, ((K - 1, 0), (0, 0)))
    out = jnp.full_like(xf, bias[0])
    for k in range(K):
        out = out + weight[k] * xp[k:k + seq_len, :]
    return out.reshape(x.shape)


if __name__ == "__main__":
    key = jax.random.PRNGKey(0)
    kx, kw, kb, kx2, kx3 = jax.random.split(key, 5)

    kernel_size = 3
    weight = jax.random.uniform(kw, (kernel_size,), minval=-0.5, maxval=0.5,
                                dtype=jnp.float32)
    bias = jax.random.uniform(kb, (1,), minval=-0.5, maxval=0.5,
                              dtype=jnp.float32)

    # Test 1: module-typical small shape (single block, no-halo kernel variant).
    seq_len, batch, heads, d_k = 8, 2, 4, 16
    x = jax.random.normal(kx, (seq_len, batch, heads, d_k), dtype=jnp.float32)
    out = jax.block_until_ready(spatial_depthwise_shared_conv(x, weight, bias))
    ref = _reference(x, weight, bias)
    assert out.shape == (seq_len, batch, heads, d_k)
    assert jnp.allclose(out, ref, atol=1e-5, rtol=1e-5)

    # Test 2: multi-block grid (exercises seq tiling + halo, lane tiling,
    # ragged last seq block).
    x2 = jax.random.normal(kx2, (40, 2, 2, 64), dtype=jnp.float32)   # F = 256
    out2 = jax.block_until_ready(
        spatial_depthwise_shared_conv(x2, weight, bias, tile_seq=16, tile_lane=128))
    ref2 = _reference(x2, weight, bias)
    assert jnp.allclose(out2, ref2, atol=1e-5, rtol=1e-5)

    # Test 3: bf16 input path (bf16 tap math, dtype-aware halo alignment).
    x3 = jax.random.normal(kx3, (16, 2, 2, 64), dtype=jnp.float32).astype(jnp.bfloat16)
    out3 = jax.block_until_ready(spatial_depthwise_shared_conv(x3, weight, bias))
    ref3 = _reference(x3.astype(jnp.float32), weight, bias)
    assert out3.dtype == jnp.bfloat16
    assert jnp.allclose(out3.astype(jnp.float32), ref3, atol=0.15, rtol=0.05)

    print("KERNEL_OK")
</pallas_src>

<mosaic_0001>
module attributes {stable_mosaic.version = 11 : i64} {
  func.func @_shared_dw_conv_kernel(%arg0: i32, %arg1: i32, %arg2: memref<1x3xf32, #tpu.memory_space<smem>>, %arg3: memref<1x1xf32, #tpu.memory_space<smem>>, %arg4: memref<8x128xf32, #tpu.memory_space<vmem>>, %arg5: memref<8x128xf32, #tpu.memory_space<vmem>>) attributes {dimension_semantics = [#tpu.dimension_semantics<parallel>, #tpu.dimension_semantics<parallel>], iteration_bounds = array<i64: 1, 1>, scalar_prefetch = 0 : i64, scratch_operands = 0 : i64, tpu.core_type = #tpu.core_type<tc>, window_params = [{transform_indices = @transform_0, window_bounds = array<i64: 1, 3>}, {transform_indices = @transform_1, window_bounds = array<i64: 1, 1>}, {transform_indices = @transform_2, window_bounds = array<i64: 8, 128>}, {transform_indices = @transform_3, window_bounds = array<i64: 8, 128>}]} {
    %c0 = arith.constant 0 : index
    %c0_0 = arith.constant 0 : index
    %0 = vector.load %arg4[%c0, %c0_0] : memref<8x128xf32, #tpu.memory_space<vmem>>, vector<8x128xf32>
    %c0_1 = arith.constant 0 : index
    %c2 = arith.constant 2 : index
    %1 = memref.load %arg2[%c0_1, %c2] : memref<1x3xf32, #tpu.memory_space<smem>>
    %2 = vector.broadcast %1 : f32 to vector<8x128xf32>
    %3 = arith.mulf %2, %0 : vector<8x128xf32>
    %c0_2 = arith.constant 0 : index
    %c0_3 = arith.constant 0 : index
    %4 = memref.load %arg3[%c0_2, %c0_3] : memref<1x1xf32, #tpu.memory_space<smem>>
    %5 = vector.broadcast %4 : f32 to vector<8x128xf32>
    %6 = arith.addf %3, %5 : vector<8x128xf32>
    %cst = arith.constant 0.000000e+00 : f32
    %7 = vector.broadcast %cst : f32 to vector<8x128xf32>
    %8 = tpu.concatenate %7, %0 in 0 : vector<8x128xf32>, vector<8x128xf32> -> vector<16x128xf32>
    %9 = vector.extract_strided_slice %8 {offsets = [6, 0], sizes = [8, 128], strides = [1, 1]} : vector<16x128xf32> to vector<8x128xf32>
    %c0_4 = arith.constant 0 : index
    %c0_5 = arith.constant 0 : index
    %10 = memref.load %arg2[%c0_4, %c0_5] : memref<1x3xf32, #tpu.memory_space<smem>>
    %11 = vector.broadcast %10 : f32 to vector<8x128xf32>
    %12 = arith.mulf %11, %9 : vector<8x128xf32>
    %13 = arith.addf %6, %12 : vector<8x128xf32>
    %14 = vector.extract_strided_slice %8 {offsets = [7, 0], sizes = [8, 128], strides = [1, 1]} : vector<16x128xf32> to vector<8x128xf32>
    %c0_6 = arith.constant 0 : index
    %c1 = arith.constant 1 : index
    %15 = memref.load %arg2[%c0_6, %c1] : memref<1x3xf32, #tpu.memory_space<smem>>
    %16 = vector.broadcast %15 : f32 to vector<8x128xf32>
    %17 = arith.mulf %16, %14 : vector<8x128xf32>
    %18 = arith.addf %13, %17 : vector<8x128xf32>
    %c0_7 = arith.constant 0 : index
    %c0_8 = arith.constant 0 : index
    %19 = vector.load %arg5[%c0_7, %c0_8] : memref<8x128xf32, #tpu.memory_space<vmem>>, vector<8x128xf32>
    tpu.vector_store %arg5[%c0_7, %c0_8], %18 {strides = array<i32>} : memref<8x128xf32, #tpu.memory_space<vmem>>, vector<8x128xf32>,
    return
  }
  func.func @transform_0(%arg0: i32, %arg1: i32) -> (i32, i32) {
    %c0_i32 = arith.constant 0 : i32
    %c0_i32_0 = arith.constant 0 : i32
    %c0_i32_1 = arith.constant 0 : i32
    return %c0_i32, %c0_i32_0 : i32, i32
  }
  func.func @transform_1(%arg0: i32, %arg1: i32) -> (i32, i32) {
    %c0_i32 = arith.constant 0 : i32
    %c0_i32_0 = arith.constant 0 : i32
    %c0_i32_1 = arith.constant 0 : i32
    return %c0_i32, %c0_i32_0 : i32, i32
  }
  func.func @transform_2(%arg0: i32, %arg1: i32) -> (i32, i32) {
    %c0_i32 = arith.constant 0 : i32
    return %arg0, %arg1 : i32, i32
  }
  func.func @transform_3(%arg0: i32, %arg1: i32) -> (i32, i32) {
    %c0_i32 = arith.constant 0 : i32
    return %arg0, %arg1 : i32, i32
  }
}

</mosaic_0001>

<bundles_post_ra>
// kernel: spatial_depthwise_shared_conv.1
= control target key start
LH: loop header
LB: loop body
LE: loop exit
PB: predicated region body
PF: predicated region fallthrough
CT: control target
= control target key end

     0   :  { %9 = vsyncpa [#allocation4], 0  ;;  %s115_s0 = inlined_call_operand.vmem [shape: f32[1,3], index: 0, kind: input, shape index: {}]   ;;  %s116_s1 = inlined_call_operand.<no memory space> [shape: f32[1,1], index: 1, kind: input, shape index: {}]   ;;  %s117_s2 = inlined_call_operand.vmem [shape: f32[8,128], index: 2, kind: input, shape index: {}]   ;;  %s118_s3 = inlined_call_operand.vmem [shape: f32[8,128], index: 3, kind: output, shape index: {}]  }
   0x1   :  { %s16_s14 = sshll.u32 %s115_s0, 4  ;;  %s17_s14 = int_to_ptr.vmem [resolvable:$true] %s16_s14 }
   0x2   :  { %s68_s15 = scalar_lea.vmem %s17_s14, 16  ;;  %p73_p1 = scmp.lt.s32.totalorder %s17_s14, %s17_s14 }
   0x3   :  { %p69_p0 = scmp.ne.s32.totalorder %s17_s14, %s68_s15  ;;  %p74_p2 = scmp.lt.s32.totalorder %s68_s15, %s68_s15 }
   0x5   :  { %p75_p3 = por %p74_p2, %p73_p1 }
   0x7   :  { %p76_p4 = pnand %p75_p3, %p69_p0 }
   0x9   :  { %79 = shalt.err (!%p76_p4)
}
   0xa   :  { %s82_s16 = smov [#allocation3]  }
   0xb   :  { %19 = dma.vmem_to_smem %s17_s14, 16, %s82_s16, [#allocation4]  }
   0xc   :  { %80 = dma.done.wait [#allocation4], 16  }
   0xd   :  { %81 = vsyncadd [#allocation4], 4294967280 }
   0xe   :  { %27 = sfence }
   0xf   :  { %s65_s17 = sld [smem:[#allocation3 + $0x2]]  ;;  %v28_v0 = vld [vmem:[%s117_s2] sm:$0xff]  ;;  %v33_v2 = vstv %s116_s1  ;;  %vm41_vm0 = vcmask 1041408   ;;  %vm53_vm1 = vcmask 1040384  }
  0x10   :  { %s35_s18 = sld [smem:[#allocation3]] }
  0x11   :  { %s66_s19 = sld [smem:[#allocation3 + $0x1]] }
  0x15   :  { %v30_v1 = vstv %s65_s17 }
  0x16   :  { %v31_v3 = vmul.f32 %v30_v1, %v28_v0  ;;  %v36_v4 = vstv %s35_s18 }
  0x17   :  { %v37_v5 = vmul.f32 0.0, %v36_v4  ;;  %v38_v6 = vmul.f32 %v36_v4, %v28_v0  ;;  %v48_v7 = vstv %s66_s19 }
  0x18   :  { %v34_v8 = vadd.f32 %v33_v2, %v31_v3  ;;  %v49_v9 = vmul.f32 0.0, %v48_v7  ;;  %v50_v10 = vmul.f32 %v48_v7, %v28_v0 }
  0x19   :  { %v42_v11 = vrot.slane %v37_v5, 6  ;;  %v43_v12 = vrot.slane %v38_v6, 6 }
  0x1a   :  { %v54_v13 = vrot.slane %v49_v9, 7  ;;  %v55_v14 = vrot.slane %v50_v10, 7 }
  0x1b   :  { %v44_v15 = vsel %vm41_vm0, %v42_v11, %v43_v12 }
  0x1c   :  { %v46_v16 = vadd.f32 %v44_v15, %v34_v8  ;;  %v56_v17 = vsel %vm53_vm1, %v54_v13, %v55_v14 }
  0x1e   :  { %v58_v18 = vadd.f32 %v56_v17, %v46_v16 }
  0x20   :  { %59 = vst [vmem:[%s118_s3] sm:$0xff] %v58_v18 }
  0x21   :  { %64 = vsyncpa [#allocation4], 1 }

</bundles_post_ra>
